<compile_context>
chip_gen: v6e
topology: v6e:2x2x1
jax: 0.10.0
libtpu: 0.0.40
codegen_flags: <defaults>
</compile_context>

<pallas_src>
import functools

import jax
import jax.numpy as jnp
from jax.experimental import pallas as pl
from jax.experimental.pallas import tpu as pltpu


def _layer_norm_kernel(x_ref, o_ref, *, emb_size: int, eps: float):
    # x_ref / o_ref: (row_tile, emb_size) VMEM tiles; normalized axis on lanes.
    x = x_ref[...].astype(jnp.float32)

    # mean over the feature axis
    mean = jnp.sum(x, axis=-1, keepdims=True) * jnp.float32(1.0 / emb_size)
    diff = x - mean

    # unbiased std (ddof=1), matching torch.Tensor.std default
    var = jnp.sum(diff * diff, axis=-1, keepdims=True) * jnp.float32(
        1.0 / (emb_size - 1)
    )
    std = jnp.sqrt(var)

    # Per-row exact reciprocal: row_tile divides instead of row_tile*emb,
    # then a cheap broadcasted vmul across lanes.
    inv = jnp.float32(1.0) / (std + jnp.float32(eps))
    o_ref[...] = (diff * inv).astype(o_ref.dtype)


# ~4 MiB per buffered I/O tile: at that size the fixed ~0.35 us per-grid-step
# overhead is <~6% of the DMA time even at v7x's ~3.2 TB/s per-TC HBM.
_TARGET_TILE_BYTES = 4 << 20


def _vmem_budget_bytes() -> int:
    """Per-TensorCore VMEM budget for pipeline buffers + intermediates."""
    cap = None
    try:
        cap = int(pltpu.get_tpu_info().vmem_capacity_bytes)
    except Exception:
        cap = None

    is_v7 = False
    try:
        kind = jax.devices()[0].device_kind.lower()
        is_v7 = ("v7" in kind) or ("7x" in kind)
    except Exception:
        pass

    if cap is None:
        cap = 64 << 20  # conservative fallback: v7x per-TensorCore VMEM

    budget = int(cap * 0.75)  # headroom for compiler-internal scratch
    if is_v7 or cap <= (64 << 20):
        # v7x: 64 MiB physical per TensorCore (the API may report whole-chip
        # 128 MiB); keep buffers + scratch under ~48 MiB.
        budget = min(budget, 48 << 20)
    else:
        # v5e/v6e: 128 MiB physical per core; ~96 MiB leaves headroom.
        budget = min(budget, 96 << 20)
    return budget


def _pick_row_tile(rows: int, emb_size: int, itemsize: int, budget: int) -> int:
    """Row tile sized by bytes (target ~4 MiB/tile), budget, and grid shape."""
    # Sublane packing multiple: f32 -> 8 rows, bf16 -> 16, int8/fp8 -> 32.
    sublane = 8 * max(1, 4 // itemsize)
    rows_rounded = -(-rows // sublane) * sublane

    # Per-row VMEM footprint:
    #   2x double-buffered input + 2x double-buffered output tiles
    #   + two f32 intermediates (upcast x, diff) + one downcast staging copy.
    bytes_per_row = 4 * emb_size * itemsize + 8 * emb_size + emb_size * itemsize
    max_rows_budget = max(budget // max(bytes_per_row, 1), sublane)

    # Byte-based target instead of a hard row cap.
    row_bytes = max(emb_size * itemsize, 1)
    target_rows = -(-(_TARGET_TILE_BYTES // row_bytes) // sublane) * sublane
    target_rows = max(target_rows, sublane)

    row_tile = min(max_rows_budget, target_rows, rows_rounded)
    row_tile = max((row_tile // sublane) * sublane, sublane)

    # Keep both v7x TensorCores and the double-buffer pipeline busy: aim for an
    # even, >=8-step grid when the row count permits.  Increasing the step
    # count only shrinks the tile, so the budget bound above is preserved.
    n_steps = -(-rows_rounded // row_tile)
    if rows_rounded >= 8 * sublane:
        n_steps = max(n_steps, 8)
    if n_steps > 1 and n_steps % 2 == 1:
        n_steps += 1
    row_tile = -(-rows_rounded // n_steps)
    row_tile = -(-row_tile // sublane) * sublane
    row_tile = min(row_tile, rows_rounded)
    return int(max(row_tile, sublane))


def unlearnable_layer_norm(x: jax.Array, eps: float) -> jax.Array:
    """Parameter-free layer norm over the last axis of x (any leading dims)."""
    orig_shape = x.shape
    emb_size = int(orig_shape[-1])
    assert emb_size >= 2, "unbiased std (ddof=1) requires emb_size >= 2"

    rows = 1
    for d in orig_shape[:-1]:
        rows *= int(d)

    x2d = x.reshape(rows, emb_size)

    itemsize = jnp.dtype(x.dtype).itemsize
    budget = _vmem_budget_bytes()
    row_tile = _pick_row_tile(rows, emb_size, itemsize, budget)

    kernel = functools.partial(_layer_norm_kernel, emb_size=emb_size, eps=eps)

    out2d = pl.pallas_call(
        kernel,
        out_shape=jax.ShapeDtypeStruct((rows, emb_size), x.dtype),
        grid_spec=pltpu.PrefetchScalarGridSpec(
            num_scalar_prefetch=0,
            # Ragged last block is fine: the reduction is per-row over emb, so
            # out-of-bounds rows never contaminate valid rows, and their
            # writes are masked.  No host-side padding pass needed.
            grid=(pl.cdiv(rows, row_tile),),
            in_specs=[pl.BlockSpec((row_tile, emb_size), lambda i: (i, 0))],
            out_specs=pl.BlockSpec((row_tile, emb_size), lambda i: (i, 0)),
        ),
        compiler_params=pltpu.CompilerParams(
            dimension_semantics=("parallel",),  # shards rows across TCs on v7x
            vmem_limit_bytes=budget,
        ),
    )(x2d)

    return out2d.reshape(orig_shape)


def _reference(x: jax.Array, eps: float) -> jax.Array:
    x32 = x.astype(jnp.float32)
    mean = jnp.mean(x32, axis=-1, keepdims=True)
    std = jnp.std(x32, axis=-1, keepdims=True, ddof=1)  # unbiased, like torch
    return ((x32 - mean) / (std + eps)).astype(x.dtype)


if __name__ == "__main__":
    eps = 1e-6
    key = jax.random.PRNGKey(0)
    k1, k2, k3 = jax.random.split(key, 3)

    # Small lane-dense shape consistent with the module: (batch=2, seq=8, emb=128).
    x = jax.random.normal(k1, (2, 8, 128), dtype=jnp.float32)
    out = jax.block_until_ready(unlearnable_layer_norm(x, eps))
    ref = _reference(x, eps)
    assert out.shape == x.shape
    assert jnp.allclose(out, ref, atol=1e-5, rtol=1e-5), "mismatch vs reference"

    # Ragged row count (rows = 2*13 = 26, not a multiple of the sublane tile)
    # exercises the pad-free masked last block.
    x_ragged = jax.random.normal(k2, (2, 13, 128), dtype=jnp.float32)
    out_r = jax.block_until_ready(unlearnable_layer_norm(x_ragged, eps))
    ref_r = _reference(x_ragged, eps)
    assert out_r.shape == x_ragged.shape
    assert jnp.allclose(out_r, ref_r, atol=1e-5, rtol=1e-5), "ragged mismatch"

    # Moderate row count (1024 rows) exercises the multi-step (>=8, even) grid
    # and both-TensorCore sharding path while staying small.
    x_multi = jax.random.normal(k3, (4, 256, 128), dtype=jnp.float32)
    out_m = jax.block_until_ready(unlearnable_layer_norm(x_multi, eps))
    ref_m = _reference(x_multi, eps)
    assert out_m.shape == x_multi.shape
    assert jnp.allclose(out_m, ref_m, atol=1e-5, rtol=1e-5), "multi-step mismatch"

    print("KERNEL_OK")
</pallas_src>

<mosaic_0001>
module attributes {stable_mosaic.version = 11 : i64} {
  func.func @_layer_norm_kernel(%arg0: i32, %arg1: memref<16x128xf32, #tpu.memory_space<vmem>>, %arg2: memref<16x128xf32, #tpu.memory_space<vmem>>) attributes {dimension_semantics = [#tpu.dimension_semantics<parallel>], iteration_bounds = array<i64: 1>, scalar_prefetch = 0 : i64, scratch_operands = 0 : i64, tpu.core_type = #tpu.core_type<tc>, window_params = [{transform_indices = @transform_0, window_bounds = array<i64: 16, 128>}, {transform_indices = @transform_1, window_bounds = array<i64: 16, 128>}]} {
    %c0 = arith.constant 0 : index
    %c0_0 = arith.constant 0 : index
    %0 = vector.load %arg1[%c0, %c0_0] : memref<16x128xf32, #tpu.memory_space<vmem>>, vector<16x128xf32>
    %cst = arith.constant dense<0.000000e+00> : vector<16xf32>
    %1 = vector.multi_reduction <add>, %0, %cst [1] : vector<16x128xf32> to vector<16xf32>
    %2 = vector.shape_cast %1 : vector<16xf32> to vector<16x1xf32>
    %cst_1 = arith.constant 7.812500e-03 : f32
    %3 = vector.broadcast %cst_1 : f32 to vector<16x1xf32>
    %4 = arith.mulf %2, %3 : vector<16x1xf32>
    %5 = vector.broadcast %4 : vector<16x1xf32> to vector<16x128xf32>
    %6 = arith.subf %0, %5 : vector<16x128xf32>
    %7 = arith.mulf %6, %6 : vector<16x128xf32>
    %cst_2 = arith.constant dense<0.000000e+00> : vector<16xf32>
    %8 = vector.multi_reduction <add>, %7, %cst_2 [1] : vector<16x128xf32> to vector<16xf32>
    %9 = vector.shape_cast %8 : vector<16xf32> to vector<16x1xf32>
    %cst_3 = arith.constant 0.00787401571 : f32
    %10 = vector.broadcast %cst_3 : f32 to vector<16x1xf32>
    %11 = arith.mulf %9, %10 : vector<16x1xf32>
    %12 = math.sqrt %11 : vector<16x1xf32>
    %cst_4 = arith.constant 9.99999997E-7 : f32
    %13 = vector.broadcast %cst_4 : f32 to vector<16x1xf32>
    %14 = arith.addf %12, %13 : vector<16x1xf32>
    %cst_5 = arith.constant 1.000000e+00 : f32
    %15 = vector.broadcast %cst_5 : f32 to vector<16x1xf32>
    %16 = arith.divf %15, %14 : vector<16x1xf32>
    %17 = vector.broadcast %16 : vector<16x1xf32> to vector<16x128xf32>
    %18 = arith.mulf %6, %17 : vector<16x128xf32>
    %c0_6 = arith.constant 0 : index
    %c0_7 = arith.constant 0 : index
    %19 = vector.load %arg2[%c0_6, %c0_7] : memref<16x128xf32, #tpu.memory_space<vmem>>, vector<16x128xf32>
    tpu.vector_store %arg2[%c0_6, %c0_7], %18 {strides = array<i32>} : memref<16x128xf32, #tpu.memory_space<vmem>>, vector<16x128xf32>,
    return
  }
  func.func @transform_0(%arg0: i32) -> (i32, i32) {
    %c0_i32 = arith.constant 0 : i32
    %c0_i32_0 = arith.constant 0 : i32
    return %arg0, %c0_i32 : i32, i32
  }
  func.func @transform_1(%arg0: i32) -> (i32, i32) {
    %c0_i32 = arith.constant 0 : i32
    %c0_i32_0 = arith.constant 0 : i32
    return %arg0, %c0_i32 : i32, i32
  }
}

</mosaic_0001>

<bundles_post_ra>
// kernel: tpu_custom_call.1
= control target key start
LH: loop header
LB: loop body
LE: loop exit
PB: predicated region body
PF: predicated region fallthrough
CT: control target
= control target key end

     0   :  { %6 = vsyncpa [#allocation3], 0  ;;  %s164_s0 = inlined_call_operand.hbm [shape: f32[16,128], index: 0, kind: input, shape index: {}]   ;;  %s165_s1 = inlined_call_operand.hbm [shape: f32[16,128], index: 1, kind: output, shape index: {}]  }
   0x1   :  { %7 = vsyncpa [#allocation4], 0  ;;  %s138_s6 = smov [#allocation2]  }
   0x2   :  { %s13_s7 = sshll.u32 %s138_s6, 4  ;;  %s14_s7 = int_to_ptr.vmem [resolvable:$true] %s13_s7 }
   0x3   :  { %s102_s8 = scalar_lea.vmem %s14_s7, 256  ;;  %p107_p1 = scmp.lt.s32.totalorder %s14_s7, %s14_s7 }
   0x4   :  { %p103_p0 = scmp.ne.s32.totalorder %s14_s7, %s102_s8  ;;  %p108_p2 = scmp.lt.s32.totalorder %s102_s8, %s102_s8 }
   0x6   :  { %p109_p3 = por %p108_p2, %p107_p1 }
   0x8   :  { %p110_p4 = pnand %p109_p3, %p103_p0 }
   0xa   :  { %113 = shalt.err (!%p110_p4)
}
   0xb   :  { %s139_s9 = smov 128   ;;  %s140_s10 = smov 8  }
   0xc   :  { %19 = dma.hbm_to_vmem [thread:$0]  %s164_s0, 256, %s14_s7, [#allocation3], %s139_s9, %s139_s9, %s140_s10  }
   0xd   :  { %134 = dma.done.wait [#allocation3], 256  }
   0xe   :  { %135 = vsyncadd [#allocation3], 4294967040  ;;  %v23_v0 = vld [vmem:[#allocation2] sm:$0xff]  ;;  %v24_v1 = vld [vmem:[#allocation2 + $0x8] sm:$0xff]  ;;  %s141_s0 = smov [#allocation5]  }
   0xf   :  { %25 = vadd.xlane.f32.xlu0 %v23_v0  ;;  %s70_s13 = sshll.u32 %s141_s0, 4  ;;  %s71_s13 = int_to_ptr.vmem [resolvable:$true] %s70_s13 }
  0x10   :  { %s114_s14 = scalar_lea.vmem %s71_s13, 256  ;;  %p119_p6 = scmp.lt.s32.totalorder %s71_s13, %s71_s13 }
  0x11   :  { %p115_p5 = scmp.ne.s32.totalorder %s71_s13, %s114_s14  ;;  %p120_p7 = scmp.lt.s32.totalorder %s114_s14, %s114_s14 }
  0x13   :  { %27 = vadd.xlane.f32.xlu0 %v24_v1  ;;  %p121_p8 = por %p120_p7, %p119_p6 }
  0x15   :  { %p122_p9 = pnand %p121_p8, %p115_p5 }
  0x98   :  { %v26_v2 = vpop.xlane.xlu0 %25 }
  0x99   :  { %v29_v3 = vmul.f32 0.0078125, %v26_v2 }
  0x9b   :  { %v31_v4 = vsub.f32 %v23_v0, %v29_v3 }
  0x9c   :  { %v28_v5 = vpop.xlane.xlu0 %27 }
  0x9d   :  { %v30_v6 = vmul.f32 0.0078125, %v28_v5  ;;  %v33_v7 = vmul.f32 %v31_v4, %v31_v4 }
  0x9f   :  { %v32_v8 = vsub.f32 %v24_v1, %v30_v6  ;;  %35 = vadd.xlane.f32.xlu1 %v33_v7 }
  0xa1   :  { %v34_v9 = vmul.f32 %v32_v8, %v32_v8 }
  0xa3   :  { %37 = vadd.xlane.f32.xlu1 %v34_v9 }
 0x128   :  { %v36_v10 = vpop.xlane.xlu1 %35 }
 0x129   :  { %v39_v11 = vmul.f32 0.007874016, %v36_v10 }
 0x12b   :  { %86 = vrsqrt.f32 %v39_v11  ;;  %vm43_vm0 = vcmp.eq.f32.partialorder %v39_v11, inf  ;;  %v46_v16 = vand.u32 2147483648, %v39_v11  ;;  %vm45_vm1 = vcmp.eq.f32.partialorder %v39_v11, 0.0 }
 0x12c   :  { %v38_v12 = vpop.xlane.xlu1 %37 }
 0x12d   :  { %v40_v13 = vmul.f32 0.007874016, %v38_v12 }
 0x12f   :  { %88 = vrsqrt.f32 %v40_v13  ;;  %vm50_vm2 = vcmp.eq.f32.partialorder %v40_v13, inf  ;;  %v53_v22 = vand.u32 2147483648, %v40_v13  ;;  %vm52_vm3 = vcmp.eq.f32.partialorder %v40_v13, 0.0 }
 0x138   :  { %v87_v14 = vpop.eup %86 }
 0x139   :  { %v42_v15 = vmul.f32 %v87_v14, %v39_v11 }
 0x13b   :  { %v44_v17 = vsel %vm43_vm0, %v39_v11, %v42_v15 }
 0x13c   :  { %v89_v18 = vpop.eup %88  ;;  %v47_v19 = vsel %vm45_vm1, %v46_v16, %v44_v17 }
 0x13d   :  { %v49_v20 = vmul.f32 %v89_v18, %v40_v13  ;;  %v55_v21 = vadd.f32 1e-06, %v47_v19 }
 0x13f   :  { %v51_v23 = vsel %vm50_vm2, %v40_v13, %v49_v20  ;;  %90 = vrcp.f32 %v55_v21 }
 0x140   :  { %v54_v24 = vsel %vm52_vm3, %v53_v22, %v51_v23 }
 0x141   :  { %v56_v25 = vadd.f32 1e-06, %v54_v24 }
 0x143   :  { %92 = vrcp.f32 %v56_v25 }
 0x14c   :  { %v91_v26 = vpop.eup %90 }
 0x14d   :  { %v61_v27 = vmul.f32 %v91_v26, %v31_v4 }
 0x14f   :  { %63 = vst [vmem:[#allocation5] sm:$0xff] %v61_v27 }
 0x150   :  { %v93_v28 = vpop.eup %92 }
 0x151   :  { %v62_v29 = vmul.f32 %v93_v28, %v32_v8 }
 0x153   :  { %64 = vst [vmem:[#allocation5 + $0x8] sm:$0xff] %v62_v29 }
 0x154   :  { %125 = shalt.err (!%p122_p9)
}
 0x155   :  { %76 = dma.vmem_to_hbm [thread:$0]  %s71_s13, 256, %s165_s1, [#allocation4], %s139_s9, %s139_s9, %s140_s10  }
 0x156   :  { %136 = dma.done.wait [#allocation4], 256  }
 0x157   :  { %137 = vsyncadd [#allocation4], 4294967040 }
 0x158   :  { %80 = vsyncpa [#allocation3], 1 }
 0x159   :  { %81 = vsyncpa [#allocation4], 1 }

</bundles_post_ra>
